<compile_context>
chip_gen: v7x
topology: tpu7x:2x2x1
jax: 0.10.0
libtpu: 0.0.40
codegen_flags: <defaults>
</compile_context>

<pallas_src>
import functools

import jax
import jax.numpy as jnp
from jax.experimental import pallas as pl
from jax.experimental.pallas import tpu as pltpu


def _focal_loss_kernel(x_ref, t_ref, o_ref, *, alpha, gamma, block_n, n_valid,
                       needs_mask):
    """One batch tile: softmax focal loss, reduced to a per-block partial sum."""
    x = x_ref[...].astype(jnp.float32)            # (bn, C) logits
    t = t_ref[...].astype(jnp.float32)            # (bn, C) class mask

    # Row-wise (class-axis) softmax statistics, numerically stabilized.
    m = jnp.max(x, axis=1, keepdims=True)         # (bn, 1)
    xs = x - m
    e = jnp.exp(xs)                               # (bn, C) — only full-tile EUP op
    denom = jnp.sum(e, axis=1, keepdims=True)     # (bn, 1)
    num = jnp.sum(e * t, axis=1, keepdims=True)   # (bn, 1) == sum(P*mask)*denom

    # probs = (softmax(x) * t).sum(1) without a full-tile divide: (bn,1) work only.
    probs = num * pl.reciprocal(denom, approx=False)

    # log(probs) = log(num) - log(denom).  If num underflows to 0 (target logit
    # far below the row max) fall back to sum(t*(x-m)) - log(denom), which is
    # the exact log-softmax gather for one-hot targets and never yields -inf.
    log_denom = jnp.log(denom)
    t_logit = jnp.sum(t * xs, axis=1, keepdims=True)
    log_num = jnp.where(num > 0, jnp.log(num), t_logit)
    log_p = log_num - log_denom

    # gamma is a Python int here -> integer_pow (plain VPU multiplies).
    focal = (1.0 - probs) ** gamma
    batch_loss = (-alpha) * focal * log_p         # (bn, 1)

    if needs_mask:
        rows = (jax.lax.broadcasted_iota(jnp.int32, (block_n, 1), 0)
                + pl.program_id(0) * block_n)
        batch_loss = jnp.where(rows < n_valid, batch_loss, 0.0)

    # Per-block partial sum; grid axis is fully parallel (both TCs on v7x).
    o_ref[...] = jnp.broadcast_to(jnp.sum(batch_loss), (1, 1, 128))


def focal_loss(inputs, targets, *, alpha=1.0, gamma=3, size_average=True,
               block_n=2048, vmem_limit_bytes=32 * 1024 * 1024):
    """Pallas TPU focal loss. inputs/targets: (N, C). Returns scalar f32."""
    N, C = inputs.shape
    assert targets.shape == (N, C)

    # Batch tile: big enough to amortize ~0.35us/step pipeline overhead, small
    # enough that 2 inputs x 2 pipeline buffers stay inside the scoped VMEM
    # budget (v7x only has 64 MiB physical VMEM, 32 MiB scoped default).
    budget = int(0.75 * vmem_limit_bytes)
    bytes_per_row = 2 * 2 * C * 4                 # 2 inputs x 2 buffers x f32 row
    bn = min(int(block_n), max(8, budget // bytes_per_row))
    bn = max(8, (bn // 8) * 8)                    # sublane multiple
    if bn >= N:                                   # single-block case
        bn = max(8, -(-N // 8) * 8)

    num_blocks = -(-N // bn)                      # cdiv
    n_pad = num_blocks * bn
    x, t = inputs, targets
    if n_pad != N:
        x = jnp.pad(x, ((0, n_pad - N), (0, 0)))
        t = jnp.pad(t, ((0, n_pad - N), (0, 0)))

    g = int(gamma) if float(gamma) == int(gamma) else float(gamma)
    kernel = functools.partial(
        _focal_loss_kernel, alpha=float(alpha), gamma=g, block_n=bn,
        n_valid=int(N), needs_mask=(n_pad != N))

    partials = pl.pallas_call(
        kernel,
        out_shape=jax.ShapeDtypeStruct((num_blocks, 1, 128), jnp.float32),
        grid_spec=pltpu.PrefetchScalarGridSpec(
            num_scalar_prefetch=0,
            grid=(num_blocks,),
            in_specs=[
                pl.BlockSpec((bn, C), lambda i: (i, 0)),
                pl.BlockSpec((bn, C), lambda i: (i, 0)),
            ],
            out_specs=pl.BlockSpec((1, 1, 128), lambda i: (i, 0, 0)),
        ),
        compiler_params=pltpu.CompilerParams(
            dimension_semantics=("parallel",),
            vmem_limit_bytes=int(vmem_limit_bytes)),
    )(x, t)

    total = jnp.sum(partials[:, 0, 0])
    if size_average:
        return total / jnp.float32(N)
    return total


def _focal_loss_ref(inputs, targets, alpha=1.0, gamma=3, size_average=True):
    p = jax.nn.softmax(inputs.astype(jnp.float32), axis=1)
    probs = jnp.sum(p * targets.astype(jnp.float32), axis=1, keepdims=True)
    log_p = jnp.log(probs)
    batch_loss = -alpha * (1.0 - probs) ** gamma * log_p
    return jnp.mean(batch_loss) if size_average else jnp.sum(batch_loss)


if __name__ == "__main__":
    # Module params (deterministic, in-script): class_num=32, alpha=1.0, gamma=3
    N, C = 16, 32
    alpha, gamma = 1.0, 3

    key = jax.random.PRNGKey(0)
    k_x, k_y = jax.random.split(key)
    inputs = jax.random.normal(k_x, (N, C), dtype=jnp.float32)
    labels = jax.random.randint(k_y, (N,), 0, C)
    targets = jax.nn.one_hot(labels, C, dtype=jnp.float32)    # class_mask

    loss = focal_loss(inputs, targets, alpha=alpha, gamma=gamma,
                      size_average=True)
    loss = jax.block_until_ready(loss)
    ref = _focal_loss_ref(inputs, targets, alpha, gamma, True)
    assert jnp.allclose(loss, ref, rtol=1e-5, atol=1e-6), (loss, ref)

    # Second config: N not a multiple of the tile (exercises padding + row
    # mask + multi-block parallel grid) and size_average=False.
    N2 = 20
    k_x2, k_y2 = jax.random.split(jax.random.PRNGKey(0))
    inputs2 = jax.random.normal(k_x2, (N2, C), dtype=jnp.float32)
    labels2 = jax.random.randint(k_y2, (N2,), 0, C)
    targets2 = jax.nn.one_hot(labels2, C, dtype=jnp.float32)
    loss2 = focal_loss(inputs2, targets2, alpha=alpha, gamma=gamma,
                       size_average=False, block_n=8)
    loss2 = jax.block_until_ready(loss2)
    ref2 = _focal_loss_ref(inputs2, targets2, alpha, gamma, False)
    assert jnp.allclose(loss2, ref2, rtol=1e-5, atol=1e-5), (loss2, ref2)

    print("KERNEL_OK")
</pallas_src>

<mosaic_0001>
module attributes {stable_mosaic.version = 11 : i64} {
  func.func @_focal_loss_kernel(%arg0: i32, %arg1: memref<16x32xf32, #tpu.memory_space<vmem>>, %arg2: memref<16x32xf32, #tpu.memory_space<vmem>>, %arg3: memref<1x1x128xf32, #tpu.memory_space<vmem>>) attributes {dimension_semantics = [#tpu.dimension_semantics<parallel>], iteration_bounds = array<i64: 1>, scalar_prefetch = 0 : i64, scratch_operands = 0 : i64, tpu.core_type = #tpu.core_type<tc>, window_params = [{transform_indices = @transform_0, window_bounds = array<i64: 16, 32>}, {transform_indices = @transform_1, window_bounds = array<i64: 16, 32>}, {transform_indices = @transform_2, window_bounds = array<i64: 1, 1, 128>}]} {
    %c0 = arith.constant 0 : index
    %c0_0 = arith.constant 0 : index
    %0 = vector.load %arg1[%c0, %c0_0] : memref<16x32xf32, #tpu.memory_space<vmem>>, vector<16x32xf32>
    %c0_1 = arith.constant 0 : index
    %c0_2 = arith.constant 0 : index
    %1 = vector.load %arg2[%c0_1, %c0_2] : memref<16x32xf32, #tpu.memory_space<vmem>>, vector<16x32xf32>
    %cst = arith.constant dense<0xFF800000> : vector<16xf32>
    %2 = vector.multi_reduction <maximumf>, %0, %cst [1] : vector<16x32xf32> to vector<16xf32>
    %3 = vector.shape_cast %2 : vector<16xf32> to vector<16x1xf32>
    %4 = vector.broadcast %3 : vector<16x1xf32> to vector<16x32xf32>
    %5 = arith.subf %0, %4 : vector<16x32xf32>
    %6 = math.exp %5 : vector<16x32xf32>
    %cst_3 = arith.constant dense<0.000000e+00> : vector<16xf32>
    %7 = vector.multi_reduction <add>, %6, %cst_3 [1] : vector<16x32xf32> to vector<16xf32>
    %8 = vector.shape_cast %7 : vector<16xf32> to vector<16x1xf32>
    %9 = arith.mulf %6, %1 : vector<16x32xf32>
    %cst_4 = arith.constant dense<0.000000e+00> : vector<16xf32>
    %10 = vector.multi_reduction <add>, %9, %cst_4 [1] : vector<16x32xf32> to vector<16xf32>
    %11 = vector.shape_cast %10 : vector<16xf32> to vector<16x1xf32>
    %12 = tpu.reciprocal %8 : vector<16x1xf32> -> vector<16x1xf32>
    %13 = arith.mulf %11, %12 : vector<16x1xf32>
    %14 = math.log %8 : vector<16x1xf32>
    %15 = arith.mulf %1, %5 : vector<16x32xf32>
    %cst_5 = arith.constant dense<0.000000e+00> : vector<16xf32>
    %16 = vector.multi_reduction <add>, %15, %cst_5 [1] : vector<16x32xf32> to vector<16xf32>
    %17 = vector.shape_cast %16 : vector<16xf32> to vector<16x1xf32>
    %cst_6 = arith.constant 0.000000e+00 : f32
    %18 = vector.broadcast %cst_6 : f32 to vector<16x1xf32>
    %19 = arith.cmpf ogt, %11, %18 : vector<16x1xf32>
    %20 = math.log %11 : vector<16x1xf32>
    %21 = arith.select %19, %20, %17 : vector<16x1xi1>, vector<16x1xf32>
    %22 = arith.subf %21, %14 : vector<16x1xf32>
    %cst_7 = arith.constant 1.000000e+00 : f32
    %23 = vector.broadcast %cst_7 : f32 to vector<16x1xf32>
    %24 = arith.subf %23, %13 : vector<16x1xf32>
    %25 = arith.mulf %24, %24 : vector<16x1xf32>
    %26 = arith.mulf %24, %25 : vector<16x1xf32>
    %cst_8 = arith.constant -1.000000e+00 : f32
    %27 = vector.broadcast %cst_8 : f32 to vector<16x1xf32>
    %28 = arith.mulf %27, %26 : vector<16x1xf32>
    %29 = arith.mulf %28, %22 : vector<16x1xf32>
    %30 = vector.shape_cast %29 : vector<16x1xf32> to vector<1x16x1xf32>
    %cst_9 = arith.constant dense<0.000000e+00> : vector<1xf32>
    %31 = vector.multi_reduction <add>, %30, %cst_9 [1, 2] : vector<1x16x1xf32> to vector<1xf32>
    %32 = vector.shape_cast %31 : vector<1xf32> to vector<1x1x1xf32>
    %33 = vector.extract %32[0, 0, 0] : f32 from vector<1x1x1xf32>
    %34 = vector.broadcast %33 : f32 to vector<1x1x128xf32>
    %c0_10 = arith.constant 0 : index
    %c0_11 = arith.constant 0 : index
    %c0_12 = arith.constant 0 : index
    %35 = vector.load %arg3[%c0_10, %c0_11, %c0_12] : memref<1x1x128xf32, #tpu.memory_space<vmem>>, vector<1x1x128xf32>
    tpu.vector_store %arg3[%c0_10, %c0_11, %c0_12], %34 {strides = array<i32>} : memref<1x1x128xf32, #tpu.memory_space<vmem>>, vector<1x1x128xf32>,
    return
  }
  func.func @transform_0(%arg0: i32) -> (i32, i32) {
    %c0_i32 = arith.constant 0 : i32
    %c0_i32_0 = arith.constant 0 : i32
    return %arg0, %c0_i32 : i32, i32
  }
  func.func @transform_1(%arg0: i32) -> (i32, i32) {
    %c0_i32 = arith.constant 0 : i32
    %c0_i32_0 = arith.constant 0 : i32
    return %arg0, %c0_i32 : i32, i32
  }
  func.func @transform_2(%arg0: i32) -> (i32, i32, i32) {
    %c0_i32 = arith.constant 0 : i32
    %c0_i32_0 = arith.constant 0 : i32
    %c0_i32_1 = arith.constant 0 : i32
    return %arg0, %c0_i32, %c0_i32_0 : i32, i32, i32
  }
}

</mosaic_0001>

<bundles_post_ra>
// kernel: tpu_custom_call.1
= control target key start
LH: loop header
LB: loop body
LE: loop exit
PB: predicated region body
PF: predicated region fallthrough
CT: control target
= control target key end

     0   :  { %7 = vsyncpa [#allocation3], 0  ;;  %s297_s0 = inlined_call_operand.hbm [shape: f32[16,32], index: 0, kind: input, shape index: {}]   ;;  %s298_s1 = inlined_call_operand.hbm [shape: f32[16,32], index: 1, kind: input, shape index: {}]   ;;  %s299_s2 = inlined_call_operand.hbm [shape: f32[1,1,128], index: 2, kind: output, shape index: {}]  }
   0x1   :  { %8 = vsyncpa [#allocation6], 0 }
   0x2   :  { %9 = vsyncpa [#allocation4], 0  ;;  %s233_s9 = smov [#allocation2]   ;;  %s161_s13 = scalar_lea.hbm %s297_s0, 256 }
   0x3   :  { %s15_s10 = sshll.u32 %s233_s9, 4  ;;  %p162_p0 = scmp.ne.s32.totalorder %s297_s0, %s161_s13  ;;  %s16_s10 = int_to_ptr.vmem [resolvable:$true] %s15_s10 }
   0x4   :  { %p165_p1 = scmp.lt.u32.totalorder %s161_s13, %s297_s0 }
   0x6   :  { %p167_p2 = pnand %p165_p1, %p162_p0 }
   0x8   :  { %170 = shalt.err (!%p167_p2)
}
   0x9   :  { %s171_s18 = scalar_lea.vmem %s16_s10, 256  ;;  %p176_p4 = scmp.lt.s32.totalorder %s16_s10, %s16_s10 }
   0xa   :  { %p172_p3 = scmp.ne.s32.totalorder %s16_s10, %s171_s18  ;;  %p177_p5 = scmp.lt.s32.totalorder %s171_s18, %s171_s18 }
   0xc   :  { %p178_p6 = por %p177_p5, %p176_p4 }
   0xe   :  { %p179_p7 = pnand %p178_p6, %p172_p3 }
  0x10   :  { %182 = shalt.err (!%p179_p7)
}
  0x11   :  { %s234_s19 = smov 128   ;;  %s235_s20 = smov 8  }
  0x12   :  { %21 = dma.hbm_to_vmem [thread:$0]  %s297_s0, 256, %s16_s10, [#allocation3], %s234_s19, %s234_s19, %s235_s20  }
  0x13   :  { %s236_s23 = smov [#allocation5]   ;;  %s183_s27 = scalar_lea.hbm %s298_s1, 256 }
  0x14   :  { %s27_s24 = sshll.u32 %s236_s23, 4  ;;  %p184_p8 = scmp.ne.s32.totalorder %s298_s1, %s183_s27  ;;  %s28_s24 = int_to_ptr.vmem [resolvable:$true] %s27_s24 }
  0x15   :  { %p187_p9 = scmp.lt.u32.totalorder %s183_s27, %s298_s1 }
  0x17   :  { %p189_p10 = pnand %p187_p9, %p184_p8 }
  0x19   :  { %192 = shalt.err (!%p189_p10)
}
  0x1a   :  { %s193_s4 = scalar_lea.vmem %s28_s24, 256  ;;  %p198_p12 = scmp.lt.s32.totalorder %s28_s24, %s28_s24 }
  0x1b   :  { %p194_p11 = scmp.ne.s32.totalorder %s28_s24, %s193_s4  ;;  %p199_p13 = scmp.lt.s32.totalorder %s193_s4, %s193_s4 }
  0x1d   :  { %p200_p0 = por %p199_p13, %p198_p12 }
  0x1f   :  { %p201_p1 = pnand %p200_p0, %p194_p11 }
  0x21   :  { %204 = shalt.err (!%p201_p1)
}
  0x22   :  { %33 = dma.hbm_to_vmem [thread:$0]  %s298_s1, 256, %s28_s24, [#allocation6], %s234_s19, %s234_s19, %s235_s20  }
  0x23   :  { %227 = dma.done.wait [#allocation3], 256  }
  0x24   :  { %228 = vsyncadd [#allocation3], 4294967040 }
  0x25   :  { %229 = dma.done.wait [#allocation6], 256  }
  0x26   :  { %230 = vsyncadd [#allocation6], 4294967040  ;;  %vm44_vm0 = vcmask 261120   ;;  %v40_v0 = vld [vmem:[#allocation2] sm:$0xff]  ;;  %v41_v1 = vld [vmem:[#allocation2 + $0x8] sm:$0xff]  ;;  %vm107_vm3 = vcmask 7168  }
  0x27   :  { %v45_v2 = vsel %vm44_vm0, %v40_v0, -inf  ;;  %v48_v3 = vsel %vm44_vm0, %v41_v1, -inf  ;;  %v42_v11 = vld [vmem:[#allocation5] sm:$0xff]  ;;  %v43_v17 = vld [vmem:[#allocation5 + $0x8] sm:$0xff]  ;;  %s237_s1 = smov [#allocation7]  }
  0x28   :  { %46 = vmax.xlane.f32.xlu0 %v45_v2  ;;  %s128_s6 = sshll.u32 %s237_s1, 4  ;;  %s129_s6 = int_to_ptr.vmem [resolvable:$true] %s128_s6 }
  0x29   :  { %s205_s8 = scalar_lea.vmem %s129_s6, 16  ;;  %s209_s9 = scalar_lea.vmem %s129_s6, 32 }
  0x2a   :  { %p206_p2 = scmp.ne.s32.totalorder %s129_s6, %s205_s8  ;;  %p210_p3 = scmp.lt.s32.totalorder %s129_s6, %s129_s6 }
  0x2b   :  { %p211_p4 = scmp.lt.s32.totalorder %s209_s9, %s205_s8 }
  0x2c   :  { %49 = vmax.xlane.f32.xlu0 %v48_v3 }
  0x2d   :  { %p212_p5 = por %p211_p4, %p210_p3 }
  0x2f   :  { %p213_p6 = pnand %p212_p5, %p206_p2 }
  0xb5   :  { %v47_v4 = vpop.xlane.xlu0 %46 }
  0xb6   :  { %v51_v5 = vsub.f32 %v40_v0, %v47_v4 }
  0xb8   :  { %v53_v6 = vmul.f32 1.442695, %v51_v5  ;;  %v79_v15 = vmul.f32 %v51_v5, %v42_v11 }
  0xb9   :  { %v50_v7 = vpop.xlane.xlu0 %49 }
  0xba   :  { %145 = vpow2.f32 %v53_v6  ;;  %v52_v8 = vsub.f32 %v41_v1, %v50_v7  ;;  %v81_v20 = vsel %vm44_vm0, %v79_v15, 0.0 }
  0xbc   :  { %v55_v9 = vmul.f32 1.442695, %v52_v8  ;;  %v80_v22 = vmul.f32 %v52_v8, %v43_v17 }
  0xbe   :  { %147 = vpow2.f32 %v55_v9  ;;  %v84_v23 = vsel %vm44_vm0, %v80_v22, 0.0 }
  0xc4   :  { %v146_v10 = vpop.eup %145 }
  0xc5   :  { %v57_v12 = vsel %vm44_vm0, %v146_v10, 0.0  ;;  %v63_v13 = vmul.f32 %v146_v10, %v42_v11 }
  0xc6   :  { %58 = vadd.xlane.f32.xlu1 %v57_v12 }
  0xc7   :  { %v65_v14 = vsel %vm44_vm0, %v63_v13, 0.0 }
  0xc8   :  { %v148_v16 = vpop.eup %147  ;;  %66 = vadd.xlane.f32.xlu0 %v65_v14 }
  0xc9   :  { %v60_v18 = vsel %vm44_vm0, %v148_v16, 0.0  ;;  %v64_v19 = vmul.f32 %v148_v16, %v43_v17 }
  0xca   :  { %61 = vadd.xlane.f32.xlu1 %v60_v18 }
  0xcb   :  { %v68_v21 = vsel %vm44_vm0, %v64_v19, 0.0 }
  0xcc   :  { %82 = vadd.xlane.f32.xlu0 %v81_v20 }
  0xce   :  { %69 = vadd.xlane.f32.xlu1 %v68_v21 }
  0xd2   :  { %85 = vadd.xlane.f32.xlu1 %v84_v23 }
 0x153   :  { %v59_v24 = vpop.xlane.xlu1 %58 }
 0x154   :  { %149 = vrcp.f32 %v59_v24 }
 0x155   :  { %v67_v25 = vpop.xlane.xlu0 %66 }
 0x156   :  { %151 = vlog2.f32 %v67_v25  ;;  %vm87_vm1 = vcmp.gt.f32.partialorder %v67_v25, 0.0 }
 0x157   :  { %v62_v26 = vpop.xlane.xlu1 %61 }
 0x158   :  { %153 = vrcp.f32 %v62_v26 }
 0x159   :  { %155 = vlog2.f32 %v59_v24  ;;  %v83_v39 = vpop.xlane.xlu0 %82 }
 0x15a   :  { %157 = vlog2.f32 %v62_v26 }
 0x15b   :  { %v70_v27 = vpop.xlane.xlu1 %69 }
 0x15c   :  { %159 = vlog2.f32 %v70_v27  ;;  %vm88_vm2 = vcmp.gt.f32.partialorder %v70_v27, 0.0 }
 0x15e   :  { %v150_v28 = vpop.eup %149 }
 0x15f   :  { %v73_v29 = vmul.f32 %v150_v28, %v67_v25  ;;  %v86_v48 = vpop.xlane.xlu1 %85 }
 0x160   :  { %v152_v30 = vpop.eup %151 }
 0x161   :  { %v97_v31 = vsub.f32 1.0, %v73_v29  ;;  %v90_v33 = vmul.f32 0.6931472, %v152_v30 }
 0x162   :  { %v154_v32 = vpop.eup %153 }
 0x163   :  { %v99_v34 = vmul.f32 %v97_v31, %v97_v31  ;;  %v74_v35 = vmul.f32 %v154_v32, %v70_v27  ;;  %v156_v36 = vpop.eup %155  ;;  %v93_v42 = vsel %vm87_vm1, %v90_v33, %v83_v39 }
 0x164   :  { %v158_v37 = vpop.eup %157  ;;  %v76_v43 = vmul.f32 0.6931472, %v156_v36 }
 0x165   :  { %v101_v38 = vmul.f32 %v99_v34, %v97_v31  ;;  %v98_v40 = vsub.f32 1.0, %v74_v35  ;;  %v78_v47 = vmul.f32 0.6931472, %v158_v37 }
 0x166   :  { %v160_v41 = vpop.eup %159  ;;  %v95_v49 = vsub.f32 %v93_v42, %v76_v43 }
 0x167   :  { %v100_v44 = vmul.f32 %v98_v40, %v98_v40  ;;  %v92_v45 = vmul.f32 0.6931472, %v160_v41  ;;  %v103_v46 = vmul.f32 -1.0, %v101_v38 }
 0x169   :  { %v102_v50 = vmul.f32 %v100_v44, %v98_v40  ;;  %v94_v51 = vsel %vm88_vm2, %v92_v45, %v86_v48  ;;  %v105_v54 = vmul.f32 %v103_v46, %v95_v49 }
 0x16a   :  { %v96_v52 = vsub.f32 %v94_v51, %v78_v47 }
 0x16b   :  { %v104_v53 = vmul.f32 -1.0, %v102_v50  ;;  %v108_v56 = vsel %vm107_vm3, %v105_v54, 0.0 }
 0x16d   :  { %v106_v55 = vmul.f32 %v104_v53, %v96_v52 }
 0x16f   :  { %v109_v57 = vsel %vm107_vm3, %v106_v55, 0.0 }
 0x170   :  { %v110_v58 = vadd.f32 %v109_v57, %v108_v56 }
 0x172   :  { %111 = vadd.xlane.f32.xlu0 %v110_v58 }
 0x1ff   :  { %v112_v59 = vpop.xlane.xlu0 %111 }
 0x200   :  { %v113_v60 = vrot.slane %v112_v59, 4 }
 0x202   :  { %v114_v61 = vadd.f32 %v113_v60, %v112_v59 }
 0x204   :  { %v115_v62 = vrot.slane %v114_v61, 2 }
 0x206   :  { %v116_v63 = vadd.f32 %v115_v62, %v114_v61 }
 0x208   :  { %v117_v0 = vrot.slane %v116_v63, 1 }
 0x20a   :  { %v118_v1 = vadd.f32 %v117_v0, %v116_v63 }
 0x20c   :  { %138 = vpush %v118_v1 }
 0x23d   :  { %s139_s7 = spop %138 }
 0x23e   :  { %v120_v2 = vstv %s139_s7 }
 0x23f   :  { %121 = vst [vmem:[#allocation7] sm:$0x1] %v120_v2 }
 0x240   :  { %216 = shalt.err (!%p213_p6)
}
 0x241   :  { %s217_s12 = scalar_lea.hbm %s299_s2, 16 }
 0x242   :  { %p218_p7 = scmp.ne.s32.totalorder %s299_s2, %s217_s12  ;;  %p221_p8 = scmp.lt.u32.totalorder %s217_s12, %s299_s2 }
 0x244   :  { %p223_p9 = pnand %p221_p8, %p218_p7 }
 0x246   :  { %226 = shalt.err (!%p223_p9)
}
 0x247   :  { %131 = dma.vmem_to_hbm [thread:$0]  %s129_s6, 16, %s299_s2, [#allocation4]  }
 0x248   :  { %231 = dma.done.wait [#allocation4], 16  }
 0x249   :  { %232 = vsyncadd [#allocation4], 4294967280 }
 0x24a   :  { %135 = vsyncpa [#allocation3], 1 }
 0x24b   :  { %136 = vsyncpa [#allocation6], 1 }
 0x24c   :  { %137 = vsyncpa [#allocation4], 1 }

</bundles_post_ra>
